<compile_context>
chip_gen: v5e
topology: v5e:2x2
jax: 0.10.0
libtpu: 0.0.40
codegen_flags: <defaults>
</compile_context>

<pallas_src>
import functools

import jax
import jax.numpy as jnp
from jax.experimental import pallas as pl
from jax.experimental.pallas import tpu as pltpu


def _round_up(x, m):
    return ((x + m - 1) // m) * m


def _gate_kernel(x_ref, w_ref, b_ref, o_ref, acc_ref, *,
                 seq_len, tile_s, num_valid, m_pad):
    """grid = (B tiles, S tiles); S (the reduction axis) is innermost."""
    s = pl.program_id(1)

    # --- init the f32 accumulator at the start of each batch tile ---
    @pl.when(s == 0)
    def _():
        acc_ref[...] = jnp.zeros_like(acc_ref)

    # --- accumulate the partial sequence sum (native-dtype tile, f32 acc) ---
    x = x_ref[...]
    if seq_len % tile_s != 0:
        # Last S tile is partial: out-of-bounds rows hold garbage.  Zero them
        # before summing (cheap VPU select; the kernel is HBM-bound).
        row = jax.lax.broadcasted_iota(jnp.int32, x.shape, 1)
        x = jnp.where(row < (seq_len - s * tile_s), x, jnp.zeros_like(x))
    acc_ref[...] += jnp.sum(x, axis=1, dtype=jnp.float32)

    # --- epilogue: gate linear + softmax, once per batch tile ---
    @pl.when(s == pl.num_programs(1) - 1)
    def _():
        # Weight was pre-scaled by 1/S host-side, so the accumulated sequence
        # *sum* feeds the MXU directly; weight stays in its native dtype.
        logits = jax.lax.dot_general(
            acc_ref[...], w_ref[...],
            dimension_numbers=(((1,), (1,)), ((), ())),
            preferred_element_type=jnp.float32,
        ) + b_ref[...].astype(jnp.float32)                 # (TB, M_pad)

        if num_valid < m_pad:
            col = jax.lax.broadcasted_iota(jnp.int32, logits.shape, 1)
            logits = jnp.where(col < num_valid, logits, -jnp.inf)

        m = jnp.max(logits, axis=-1, keepdims=True)
        e = jnp.exp(logits - m)                            # padded lanes -> 0
        denom = jnp.sum(e, axis=-1, keepdims=True)
        o_ref[...] = (e / denom).astype(o_ref.dtype)       # exact normalize


def _choose_tiles(B, S, D, x_itemsize, w_bytes):
    """Pick (TB, TS) inside an explicit VMEM budget; prefer growing TS."""
    # Sub-32-bit dtypes pack along sublanes: align TS to 8 / 16 / 32 rows.
    pack = 8 * max(1, 4 // x_itemsize)

    # Batch tile: only needs output-sublane granularity; keep it small and
    # guarantee >= 2 B tiles when possible (v7x megacore sharding).
    if B <= 8:
        TB = B
    else:
        TB = min(64, _round_up(B, 8))
        TB = min(TB, max(8, _round_up(-(-B // 2), 8)))

    # VMEM budget: x double-buffer + 2x resident weight + f32 acc kept well
    # under the 32 MiB scoped limit requested below (v7x physical VMEM is
    # 64 MiB, v5e scoped default is 16 MiB).
    total = 16 * 1024 * 1024

    def ts_for(tb):
        avail = total - 2 * w_bytes - tb * D * 4
        return max(0, avail // 2) // max(1, tb * D * x_itemsize)

    # If even a minimal S tile would blow the budget, shrink TB (not TS).
    while TB > 8 and ts_for(TB) < pack:
        TB = max(8, _round_up(TB // 2, 8))

    ts = max(pack, ts_for(TB))
    if S <= ts:
        TS = S                      # whole sequence in one (full-dim) tile
    else:
        TS = max(pack, (ts // pack) * pack)
    return TB, TS


@functools.partial(jax.jit, static_argnames=("tile_b", "tile_s"))
def switching_gate_attention(x, weight, bias, *, tile_b=None, tile_s=None):
    """Pallas forward of SwitchingGateAttention.

    x:      (B, S, D) or (B, D)
    weight: (M, D)  -- native PyTorch nn.Linear layout (no host transpose)
    bias:   (M,)
    returns (B, M) softmax gating weights in x.dtype.
    """
    if x.ndim == 2:
        # 2-D input: torch skips the seq mean; equivalent to a length-1 seq.
        x = x[:, None, :]
    B, S, D = x.shape
    M = weight.shape[0]

    M_pad = _round_up(max(M, 128), 128)        # lane-dense weight/bias/output
    w_bytes = M_pad * D * weight.dtype.itemsize
    TB, TS = _choose_tiles(B, S, D, x.dtype.itemsize, w_bytes)
    if tile_b is not None:
        TB = tile_b
    if tile_s is not None:
        TS = tile_s

    # Fold the 1/S mean into the (tiny) weight so the kernel works on the raw
    # sequence sum; pad weight/bias to a lane-dense M_pad.  x itself is never
    # padded or copied: partial B and S tiles are handled in-kernel.
    w_scaled = (weight.astype(jnp.float32) * (1.0 / S)).astype(weight.dtype)
    w_p = jnp.zeros((M_pad, D), dtype=weight.dtype).at[:M, :].set(w_scaled)
    b_p = jnp.zeros((1, M_pad), dtype=bias.dtype).at[0, :M].set(bias)

    kernel = functools.partial(
        _gate_kernel, seq_len=S, tile_s=TS, num_valid=M, m_pad=M_pad)

    out = pl.pallas_call(
        kernel,
        out_shape=jax.ShapeDtypeStruct((B, M_pad), x.dtype),
        grid=(pl.cdiv(B, TB), pl.cdiv(S, TS)),
        in_specs=[
            pl.BlockSpec((TB, TS, D), lambda b, s: (b, s, 0)),
            pl.BlockSpec((M_pad, D), lambda b, s: (0, 0)),   # resident weight
            pl.BlockSpec((1, M_pad), lambda b, s: (0, 0)),   # resident bias
        ],
        out_specs=pl.BlockSpec((TB, M_pad), lambda b, s: (b, 0)),
        scratch_shapes=[pltpu.VMEM((TB, D), jnp.float32)],
        compiler_params=pltpu.CompilerParams(
            dimension_semantics=("parallel", "arbitrary"),
            vmem_limit_bytes=32 * 1024 * 1024),
    )(x, w_p, b_p)

    return out[:, :M]


def _reference(x, weight, bias):
    if x.ndim == 3:
        x = jnp.mean(x, axis=1)
    logits = x @ weight.T + bias
    return jax.nn.softmax(logits, axis=-1)


if __name__ == "__main__":
    key = jax.random.PRNGKey(0)

    def make_params(k, D, M):
        kw, kb = jax.random.split(k)
        bound = 1.0 / (D ** 0.5)
        w = jax.random.uniform(kw, (M, D), minval=-bound, maxval=bound,
                               dtype=jnp.float32)
        b = jax.random.uniform(kb, (M,), minval=-bound, maxval=bound,
                               dtype=jnp.float32)
        return w, b

    k0, k1, k2, k3, k4, k5 = jax.random.split(key, 6)

    # --- primary small case: batch=2, seq=8, patch_dim=32, modalities=4 ---
    B, S, D, M = 2, 8, 32, 4
    x = jax.random.normal(k0, (B, S, D), dtype=jnp.float32)
    w, b = make_params(k1, D, M)
    out = jax.block_until_ready(switching_gate_attention(x, w, b))
    ref = _reference(x, w, b)
    assert out.shape == (B, M)
    assert jnp.allclose(out, ref, atol=2e-3, rtol=2e-3), "mismatch vs reference"
    assert jnp.allclose(jnp.sum(out, axis=-1), 1.0, atol=1e-3)

    # --- partial B and S tiles, multi-step S reduction (no host padding) ---
    B2, S2, D2, M2 = 12, 100, 128, 4
    x2 = jax.random.normal(k2, (B2, S2, D2), dtype=jnp.float32)
    w2, b2 = make_params(k3, D2, M2)
    out2 = jax.block_until_ready(
        switching_gate_attention(x2, w2, b2, tile_b=8, tile_s=32))
    ref2 = _reference(x2, w2, b2)
    assert out2.shape == (B2, M2)
    assert jnp.allclose(out2, ref2, atol=2e-3, rtol=2e-3), "mismatch (partial tiles)"

    # --- larger auto-tiled case (>= 2 parallel B tiles) ---
    B3, S3, D3, M3 = 16, 1024, 128, 4
    x3 = jax.random.normal(k4, (B3, S3, D3), dtype=jnp.float32)
    w3, b3 = make_params(k5, D3, M3)
    out3 = jax.block_until_ready(switching_gate_attention(x3, w3, b3))
    assert out3.shape == (B3, M3)
    assert jnp.allclose(out3, _reference(x3, w3, b3), atol=2e-3, rtol=2e-3), \
        "mismatch (auto-tiled)"

    # --- 2-D input path (torch skips the sequence mean) ---
    x4 = jax.random.normal(k0, (4, D), dtype=jnp.float32)
    out4 = jax.block_until_ready(switching_gate_attention(x4, w, b))
    assert out4.shape == (4, M)
    assert jnp.allclose(out4, _reference(x4, w, b), atol=2e-3, rtol=2e-3), \
        "mismatch (2-D path)"

    print("KERNEL_OK")
</pallas_src>

<mosaic_0001>
module attributes {stable_mosaic.version = 11 : i64} {
  func.func @_gate_kernel(%arg0: i32, %arg1: i32, %arg2: memref<2x8x32xf32, #tpu.memory_space<vmem>>, %arg3: memref<128x32xf32, #tpu.memory_space<vmem>>, %arg4: memref<1x128xf32, #tpu.memory_space<vmem>>, %arg5: memref<2x128xf32, #tpu.memory_space<vmem>>, %arg6: memref<2x32xf32, #tpu.memory_space<vmem>>) attributes {dimension_semantics = [#tpu.dimension_semantics<parallel>, #tpu.dimension_semantics<arbitrary>], iteration_bounds = array<i64: 1, 1>, scalar_prefetch = 0 : i64, scratch_operands = 1 : i64, tpu.core_type = #tpu.core_type<tc>, window_params = [{transform_indices = @transform_0, window_bounds = array<i64: 2, 8, 32>}, {pipeline_mode = #tpu.pipeline_mode<synchronous>, transform_indices = @transform_1, window_bounds = array<i64: 128, 32>}, {pipeline_mode = #tpu.pipeline_mode<synchronous>, transform_indices = @transform_2, window_bounds = array<i64: 1, 128>}, {transform_indices = @transform_3, window_bounds = array<i64: 2, 128>}]} {
    %c0_i32 = arith.constant 0 : i32
    %0 = arith.cmpi eq, %arg1, %c0_i32 : i32
    %1 = arith.extui %0 : i1 to i32
    %c0_i32_0 = arith.constant 0 : i32
    %2 = arith.cmpi ne, %1, %c0_i32_0 : i32
    scf.if %2 {
      %cst_9 = arith.constant 0.000000e+00 : f32
      %11 = vector.broadcast %cst_9 : f32 to vector<2x32xf32>
      %c0_10 = arith.constant 0 : index
      %c0_11 = arith.constant 0 : index
      %12 = vector.load %arg6[%c0_10, %c0_11] : memref<2x32xf32, #tpu.memory_space<vmem>>, vector<2x32xf32>
      tpu.vector_store %arg6[%c0_10, %c0_11], %11 {strides = array<i32>} : memref<2x32xf32, #tpu.memory_space<vmem>>, vector<2x32xf32>,
    } else {
    }
    %c0 = arith.constant 0 : index
    %c0_1 = arith.constant 0 : index
    %c0_2 = arith.constant 0 : index
    %3 = vector.load %arg2[%c0, %c0_1, %c0_2] : memref<2x8x32xf32, #tpu.memory_space<vmem>>, vector<2x8x32xf32>
    %c0_3 = arith.constant 0 : index
    %c0_4 = arith.constant 0 : index
    %4 = vector.load %arg6[%c0_3, %c0_4] : memref<2x32xf32, #tpu.memory_space<vmem>>, vector<2x32xf32>
    %cst = arith.constant dense<0.000000e+00> : vector<2x32xf32>
    %5 = vector.multi_reduction <add>, %3, %cst [1] : vector<2x8x32xf32> to vector<2x32xf32>
    %6 = arith.addf %4, %5 : vector<2x32xf32>
    %c0_5 = arith.constant 0 : index
    %c0_6 = arith.constant 0 : index
    %7 = vector.load %arg6[%c0_5, %c0_6] : memref<2x32xf32, #tpu.memory_space<vmem>>, vector<2x32xf32>
    tpu.vector_store %arg6[%c0_5, %c0_6], %6 {strides = array<i32>} : memref<2x32xf32, #tpu.memory_space<vmem>>, vector<2x32xf32>,
    %c0_i32_7 = arith.constant 0 : i32
    %8 = arith.cmpi eq, %arg1, %c0_i32_7 : i32
    %9 = arith.extui %8 : i1 to i32
    %c0_i32_8 = arith.constant 0 : i32
    %10 = arith.cmpi ne, %9, %c0_i32_8 : i32
    scf.if %10 {
      %c0_9 = arith.constant 0 : index
      %c0_10 = arith.constant 0 : index
      %11 = vector.load %arg6[%c0_9, %c0_10] : memref<2x32xf32, #tpu.memory_space<vmem>>, vector<2x32xf32>
      %c0_11 = arith.constant 0 : index
      %c0_12 = arith.constant 0 : index
      %12 = vector.load %arg3[%c0_11, %c0_12] : memref<128x32xf32, #tpu.memory_space<vmem>>, vector<128x32xf32>
      %cst_13 = arith.constant dense<0.000000e+00> : vector<2x128xf32>
      %13 = tpu.matmul %11, %12, %cst_13 {dimension_numbers = #tpu.dot_dimension_numbers<[1], [1], [0], [0], [0, 0, 1, 0], [], []>} : vector<2x32xf32>, vector<128x32xf32>, vector<2x128xf32> -> vector<2x128xf32>
      %c0_14 = arith.constant 0 : index
      %c0_15 = arith.constant 0 : index
      %14 = vector.load %arg4[%c0_14, %c0_15] : memref<1x128xf32, #tpu.memory_space<vmem>>, vector<1x128xf32>
      %15 = vector.broadcast %14 : vector<1x128xf32> to vector<2x128xf32>
      %16 = arith.addf %13, %15 : vector<2x128xf32>
      %17 = tpu.iota {dimensions = array<i32: 1>} : vector<2x128xi32>
      %c4_i32 = arith.constant 4 : i32
      %18 = vector.broadcast %c4_i32 : i32 to vector<2x128xi32>
      %19 = arith.cmpi slt, %17, %18 : vector<2x128xi32>
      %cst_16 = arith.constant 0xFF800000 : f32
      %20 = vector.broadcast %cst_16 : f32 to vector<2x128xf32>
      %21 = arith.select %19, %16, %20 : vector<2x128xi1>, vector<2x128xf32>
      %cst_17 = arith.constant dense<0xFF800000> : vector<2xf32>
      %22 = vector.multi_reduction <maximumf>, %21, %cst_17 [1] : vector<2x128xf32> to vector<2xf32>
      %23 = vector.shape_cast %22 : vector<2xf32> to vector<2x1xf32>
      %24 = vector.broadcast %23 : vector<2x1xf32> to vector<2x128xf32>
      %25 = arith.subf %21, %24 : vector<2x128xf32>
      %26 = math.exp %25 : vector<2x128xf32>
      %cst_18 = arith.constant dense<0.000000e+00> : vector<2xf32>
      %27 = vector.multi_reduction <add>, %26, %cst_18 [1] : vector<2x128xf32> to vector<2xf32>
      %28 = vector.shape_cast %27 : vector<2xf32> to vector<2x1xf32>
      %29 = vector.broadcast %28 : vector<2x1xf32> to vector<2x128xf32>
      %30 = arith.divf %26, %29 : vector<2x128xf32>
      %c0_19 = arith.constant 0 : index
      %c0_20 = arith.constant 0 : index
      %31 = vector.load %arg5[%c0_19, %c0_20] : memref<2x128xf32, #tpu.memory_space<vmem>>, vector<2x128xf32>
      tpu.vector_store %arg5[%c0_19, %c0_20], %30 {strides = array<i32>} : memref<2x128xf32, #tpu.memory_space<vmem>>, vector<2x128xf32>,
    } else {
    }
    return
  }
  func.func @transform_0(%arg0: i32, %arg1: i32) -> (i32, i32, i32) {
    %c0_i32 = arith.constant 0 : i32
    %c0_i32_0 = arith.constant 0 : i32
    return %arg0, %arg1, %c0_i32 : i32, i32, i32
  }
  func.func @transform_1(%arg0: i32, %arg1: i32) -> (i32, i32) {
    %c0_i32 = arith.constant 0 : i32
    %c0_i32_0 = arith.constant 0 : i32
    %c0_i32_1 = arith.constant 0 : i32
    return %c0_i32, %c0_i32_0 : i32, i32
  }
  func.func @transform_2(%arg0: i32, %arg1: i32) -> (i32, i32) {
    %c0_i32 = arith.constant 0 : i32
    %c0_i32_0 = arith.constant 0 : i32
    %c0_i32_1 = arith.constant 0 : i32
    return %c0_i32, %c0_i32_0 : i32, i32
  }
  func.func @transform_3(%arg0: i32, %arg1: i32) -> (i32, i32) {
    %c0_i32 = arith.constant 0 : i32
    %c0_i32_0 = arith.constant 0 : i32
    return %arg0, %c0_i32 : i32, i32
  }
}

</mosaic_0001>

<bundles_post_ra>
// kernel: switching_gate_attention.1
= control target key start
LH: loop header
LB: loop body
LE: loop exit
PB: predicated region body
PF: predicated region fallthrough
CT: control target
= control target key end

     0   :  { %vm24_vm0 = vcmask 261120   ;;  %s341_s0 = inlined_call_operand.vmem [shape: f32[2,8,32], index: 0, kind: input, shape index: {}]   ;;  %s342_s1 = inlined_call_operand.vmem [shape: f32[128,32], index: 1, kind: input, shape index: {}]   ;;  %s343_s2 = inlined_call_operand.vmem [shape: f32[1,128], index: 2, kind: input, shape index: {}]   ;;  %s344_s3 = inlined_call_operand.hbm [shape: f32[2,128], index: 3, kind: output, shape index: {}]  }
   0x1   :  { %v66_v0 = vld [vmem:[%s342_s1 + $0x78] sm:$0xff]  ;;  %v65_v1 = vld [vmem:[%s342_s1 + $0x70] sm:$0xff] }
   0x2   :  { %188 = vmatpush.xpose.msk.msra.mxu0 %vm24_vm0, %v66_v0 }
   0x3   :  { %8 = vsyncpa [#allocation4], 0  ;;  %v64_v2 = vld [vmem:[%s342_s1 + $0x68] sm:$0xff]  ;;  %v21_v3 = vld [vmem:[%s341_s0] sm:$0xff]  ;;  %vm19_vm1 = vcmask 254976   ;;  %v238_v15 = vmov 0.0   ;;  %v142_v37 = vlaneseq }
   0x4   :  { %v22_v4 = vld [vmem:[%s341_s0 + $0x8] sm:$0xff]  ;;  %v25_v5 = vsel %vm24_vm0, %v21_v3, 0.0  ;;  %v63_v9 = vld [vmem:[%s342_s1 + $0x60] sm:$0xff]  ;;  %v62_v14 = vld [vmem:[%s342_s1 + $0x58] sm:$0xff]  ;;  %20 = vst.msk [vmem:[#allocation2] sm:$0x3] %vm19_vm1, %v238_v15 }
   0x5   :  { %v32_v6 = vsel %vm24_vm0, %v22_v4, 0.0  ;;  %v26_v7 = vrot.slane %v25_v5, 4  ;;  %v61_v20 = vld [vmem:[%s342_s1 + $0x50] sm:$0xff]  ;;  %vm41_vm2 = vcmask 1041409   ;;  %v60_v25 = vld [vmem:[%s342_s1 + $0x48] sm:$0xff]  ;;  %v59_v27 = vld [vmem:[%s342_s1 + $0x40] sm:$0xff] }
   0x6   :  { %189 = vmatpush.xpose.msk.msra.mxu0 %vm24_vm0, %v65_v1  ;;  %v33_v8 = vrot.slane %v32_v6, 4  ;;  %v58_v28 = vld [vmem:[%s342_s1 + $0x38] sm:$0xff]  ;;  %v57_v29 = vld [vmem:[%s342_s1 + $0x30] sm:$0xff]  ;;  %v56_v30 = vld [vmem:[%s342_s1 + $0x28] sm:$0xff]  ;;  %v143_v38 = vand.u32 127, %v142_v37  ;;  %vm146_vm4 = vcmask 1041408  }
   0x7   :  { %v27_v10 = vadd.f32 %v26_v7, %v25_v5  ;;  %v55_v31 = vld [vmem:[%s342_s1 + $0x20] sm:$0xff]  ;;  %v54_v32 = vld [vmem:[%s342_s1 + $0x18] sm:$0xff]  ;;  %v53_v33 = vld [vmem:[%s342_s1 + $0x10] sm:$0xff]  ;;  %s179_s0 = sshll.u32 %s344_s3, 4  ;;  %s180_s0 = int_to_ptr.hbm [resolvable:$true] %s179_s0 }
   0x8   :  { %v34_v11 = vadd.f32 %v33_v8, %v32_v6  ;;  %v52_v34 = vld [vmem:[%s342_s1 + $0x8] sm:$0xff]  ;;  %v51_v35 = vld [vmem:[%s342_s1] sm:$0xff]  ;;  %vm144_vm3 = vcmp.lt.s32.totalorder %v143_v38, 4  ;;  %s239_s1 = smov [#allocation3]  }
   0x9   :  { %v28_v12 = vrot.slane %v27_v10, 2  ;;  %v207_v39 = vld [vmem:[%s343_s2] ss:$0 sm:$0xff]  ;;  %s177_s2 = sshll.u32 %s239_s1, 4  ;;  %s178_s2 = int_to_ptr.vmem [resolvable:$true] %s177_s2 }
   0xa   :  { %190 = vmatpush.xpose.msk.msra.mxu0 %vm24_vm0, %v64_v2  ;;  %v35_v13 = vrot.slane %v34_v11, 2 }
   0xb   :  { %v29_v16 = vadd.f32 %v28_v12, %v27_v10  ;;  %v23_v23 = vld [vmem:[#allocation2] sm:$0x3] }
   0xc   :  { %v36_v17 = vadd.f32 %v35_v13, %v34_v11 }
   0xd   :  { %v30_v18 = vrot.slane %v29_v16, 1 }
   0xe   :  { %191 = vmatpush.xpose.msk.msra.mxu0 %vm24_vm0, %v63_v9  ;;  %v37_v19 = vrot.slane %v36_v17, 1 }
   0xf   :  { %v31_v21 = vadd.f32 %v30_v18, %v29_v16 }
  0x10   :  { %v38_v22 = vadd.f32 %v37_v19, %v36_v17 }
  0x12   :  { %192 = vmatpush.xpose.msk.msra.mxu0 %vm24_vm0, %v62_v14  ;;  %v42_v24 = vsel %vm41_vm2, %v38_v22, %v31_v21 }
  0x13   :  { %v44_v26 = vadd.f32 %v42_v24, %v23_v23 }
  0x15   :  { %46 = vst.msk [vmem:[#allocation2] sm:$0x3] %vm19_vm1, %v44_v26 }
  0x16   :  { %193 = vmatpush.xpose.msk.msra.mxu0 %vm24_vm0, %v61_v20 }
  0x1a   :  { %194 = vmatpush.xpose.msk.msra.mxu0 %vm24_vm0, %v60_v25 }
  0x1c   :  { %v50_v36 = vld [vmem:[#allocation2] sm:$0x3] }
  0x1e   :  { %195 = vmatpush.xpose.msk.msra.mxu0 %vm24_vm0, %v59_v27 }
  0x22   :  { %196 = vmatpush.xpose.msk.msra.mxu0 %vm24_vm0, %v58_v28 }
  0x26   :  { %197 = vmatpush.xpose.msk.msra.mxu0 %vm24_vm0, %v57_v29 }
  0x2a   :  { %198 = vmatpush.xpose.msk.msra.mxu0 %vm24_vm0, %v56_v30 }
  0x2e   :  { %199 = vmatpush.xpose.msk.msra.mxu0 %vm24_vm0, %v55_v31 }
  0x32   :  { %200 = vmatpush.xpose.msk.msra.mxu0 %vm24_vm0, %v54_v32 }
  0x36   :  { %201 = vmatpush.xpose.msk.msra.mxu0 %vm24_vm0, %v53_v33 }
  0x3a   :  { %202 = vmatpush.xpose.msk.msra.mxu0 %vm24_vm0, %v52_v34 }
  0x3e   :  { %203 = vmatpush.xpose.msk.msra.mxu0 %vm24_vm0, %v51_v35 }
  0x41   :  { %204 = vmatmul.msk.f32.vlgmr.msra.gmra.mxu0 %vm24_vm0, %v50_v36 }
  0xbe   :  { %v139_v40 = vpop.f32.mrf.mxu0 }
  0xbf   :  { %v140_v41 = vadd.f32 %v207_v39, %v139_v40 }
  0xc1   :  { %v145_v42 = vsel %vm144_vm3, %v140_v41, -inf }
  0xc2   :  { %v147_v43 = vsel %vm146_vm4, %v145_v42, -inf }
  0xc3   :  { %148 = vmax.xlane.f32.xlu0 %v147_v43 }
 0x136   :  { %v149_v44 = vpop.xlane.xlu0 %148 }
 0x137   :  { %v150_v45 = vsub.f32 %v145_v42, %v149_v44 }
 0x139   :  { %v151_v46 = vmul.f32 1.442695, %v150_v45 }
 0x13b   :  { %208 = vpow2.f32 %v151_v46 }
 0x141   :  { %v209_v47 = vpop.eup %208 }
 0x142   :  { %v153_v48 = vsel %vm146_vm4, %v209_v47, 0.0 }
 0x143   :  { %154 = vadd.xlane.f32.xlu0 %v153_v48 }
 0x1b6   :  { %v155_v49 = vpop.xlane.xlu0 %154 }
 0x1b7   :  { %210 = vrcp.f32 %v155_v49  ;;  %v167_v53 = vand.u32 2147483648, %v155_v49  ;;  %v165_v55 = vand.u32 2147483647, %v155_v49  ;;  %vm161_vm6 = vweird.f32 %v155_v49 }
 0x1b9   :  { %v168_v57 = vor.u32 1.1754944e-38, %v167_v53  ;;  %vm166_vm8 = vcmp.eq.f32.partialorder %v165_v55, 8.507059e+37 }
 0x1bd   :  { %v211_v50 = vpop.eup %210 }
 0x1be   :  { %v157_v51 = vmul.f32 %v211_v50, %v155_v49  ;;  %vm162_vm5 = vweird.f32 %v211_v50 }
 0x1bf   :  { %vm163_vm7 = vmor %vm161_vm6, %vm162_vm5 }
 0x1c0   :  { %v158_v52 = vsub.f32 1.0, %v157_v51 }
 0x1c2   :  { %v159_v54 = vmul.f32 %v211_v50, %v158_v52 }
 0x1c4   :  { %v160_v56 = vadd.f32 %v211_v50, %v159_v54 }
 0x1c6   :  { %v164_v58 = vsel %vm163_vm7, %v211_v50, %v160_v56 }
 0x1c7   :  { %v169_v59 = vsel %vm166_vm8, %v168_v57, %v164_v58 }
 0x1c8   :  { %v170_v60 = vmul.f32 %v209_v47, %v169_v59 }
 0x1ca   :  { %171 = vst [vmem:[#allocation3] sm:$0x3] %v170_v60 }
 0x1cb   :  { %182 = dma.vmem_to_hbm [thread:$0]  %s178_s2, 32, %s180_s0, [#allocation4]  }
 0x1cc   :  { %236 = dma.done.wait [#allocation4], 32  }
 0x1cd   :  { %237 = vsyncadd [#allocation4], 4294967264 }
 0x1ce   :  { %187 = vsyncpa [#allocation4], 1 }

</bundles_post_ra>
